<compile_context>
chip_gen: v7x
topology: tpu7x:2x2x1
jax: 0.10.0
libtpu: 0.0.40
codegen_flags: <defaults>
</compile_context>

<pallas_src>
import functools

import jax
import jax.numpy as jnp
from jax import lax
from jax.experimental import pallas as pl
from jax.experimental.pallas import tpu as pltpu

_VMEM_LIMIT = 32 * 1024 * 1024  # safe scoped-VMEM budget on v5e / v6e / v7x


def _pick_tile(rows, target):
    """Largest multiple-of-8 tile <= target that evenly divides `rows` (else full rows)."""
    if rows <= target:
        return rows
    for t in range(target - target % 8, 7, -8):
        if rows % t == 0:
            return t
    return rows


# ---------------------------------------------------------------------------
# Kernel 1: kv_linear  ->  k, v   (tiled over rows, two lane-dense outputs)
# ---------------------------------------------------------------------------

def _kv_proj_kernel(x_ref, wk_ref, bk_ref, wv_ref, bv_ref, k_ref, v_ref):
    x = x_ref[...].astype(jnp.float32)                               # (TM, C)
    k = jnp.dot(x, wk_ref[...].astype(jnp.float32),
                preferred_element_type=jnp.float32) + bk_ref[...].astype(jnp.float32)
    v = jnp.dot(x, wv_ref[...].astype(jnp.float32),
                preferred_element_type=jnp.float32) + bv_ref[...].astype(jnp.float32)
    k_ref[...] = k.astype(k_ref.dtype)
    v_ref[...] = v.astype(v_ref.dtype)


def kv_projection(x2d, wk_t, bk, wv_t, bv, *, block_rows=256):
    M, C = x2d.shape
    tm = _pick_tile(M, block_rows)
    flops = 2 * 2 * M * C * C
    bytes_acc = 4 * (3 * M * C + 2 * C * C + 2 * C)
    return pl.pallas_call(
        _kv_proj_kernel,
        out_shape=(jax.ShapeDtypeStruct((M, C), x2d.dtype),
                   jax.ShapeDtypeStruct((M, C), x2d.dtype)),
        grid_spec=pltpu.PrefetchScalarGridSpec(
            num_scalar_prefetch=0,
            grid=(M // tm,),
            in_specs=[
                pl.BlockSpec((tm, C), lambda i: (i, 0)),   # x rows (pipelined)
                pl.BlockSpec((C, C), lambda i: (0, 0)),    # wk^T (resident)
                pl.BlockSpec((1, C), lambda i: (0, 0)),    # bk
                pl.BlockSpec((C, C), lambda i: (0, 0)),    # wv^T
                pl.BlockSpec((1, C), lambda i: (0, 0)),    # bv
            ],
            out_specs=[
                pl.BlockSpec((tm, C), lambda i: (i, 0)),   # k (lane-dense)
                pl.BlockSpec((tm, C), lambda i: (i, 0)),   # v (lane-dense)
            ],
        ),
        compiler_params=pltpu.CompilerParams(
            dimension_semantics=("parallel",),
            vmem_limit_bytes=_VMEM_LIMIT),
        cost_estimate=pl.CostEstimate(flops=flops, transcendentals=0,
                                      bytes_accessed=bytes_acc),
    )(x2d, wk_t, bk.reshape(1, C), wv_t, bv.reshape(1, C))


# ---------------------------------------------------------------------------
# Kernel 2: q_linear + all-head softmax attention + proj, fused, tiled over Lq
# ---------------------------------------------------------------------------

def _attn_proj_kernel(cond_ref, k_ref, v_ref, wq_ref, bq_ref, wp_ref, bp_ref,
                      o_ref, *, num_heads, head_dim, scale):
    f32 = jnp.float32
    tq, C = cond_ref.shape

    # q projection for this query tile (one full-width MXU matmul).
    c = cond_ref[...].astype(f32)
    q = jnp.dot(c, wq_ref[...].astype(f32), preferred_element_type=f32)
    q = (q + bq_ref[...].astype(f32)) * scale                         # (tq, C)

    k = k_ref[...].astype(f32)                                        # (Lk, C)
    v = v_ref[...].astype(f32)                                        # (Lk, C)

    # lane-id -> head-id map; heads are extracted with lane masks + full-width matmuls
    # (no lane slicing, no transposes, no concat -> every store stays lane dense).
    head_of_lane = lax.broadcasted_iota(jnp.int32, (1, C), 1) // head_dim

    o_acc = jnp.zeros((tq, C), f32)   # per-head outputs land in disjoint lane blocks
    for h in range(num_heads):
        m = (head_of_lane == h).astype(f32)                           # (1, C)
        # scores: (q*m) has zeros outside head h, so contracting the full C axis
        # equals q_h @ k_h^T.  dot_general consumes k "transposed" directly.
        s = lax.dot_general(q * m, k, (((1,), (1,)), ((), ())),
                            preferred_element_type=f32)               # (tq, Lk)
        s = s - jnp.max(s, axis=-1, keepdims=True)
        p = jnp.exp(s)
        p = p * pl.reciprocal(jnp.sum(p, axis=-1, keepdims=True), approx=True)
        # p @ (v*m) only writes into head h's lane block of the output.
        o_acc = o_acc + jnp.dot(p, v * m, preferred_element_type=f32)

    out = jnp.dot(o_acc, wp_ref[...].astype(f32), preferred_element_type=f32)
    o_ref[...] = (out + bp_ref[...].astype(f32)).astype(o_ref.dtype)


def cross_attention_proj(cond2d, k2d, v2d, wq_t, bq, wp_t, bp, *,
                         num_heads, block_q=128):
    Lq, C = cond2d.shape
    Lk = k2d.shape[0]
    head_dim = C // num_heads
    scale = head_dim ** -0.5
    tq = _pick_tile(Lq, block_q)

    kern = functools.partial(_attn_proj_kernel, num_heads=num_heads,
                             head_dim=head_dim, scale=scale)
    flops = (2 * Lq * C * C                       # q projection
             + num_heads * 4 * Lq * Lk * C        # masked score + pv matmuls
             + 2 * Lq * C * C)                    # output projection
    transcend = num_heads * Lq * (Lk + 1)         # exp + reciprocal
    bytes_acc = 4 * (2 * Lq * C + 2 * Lk * C + 2 * C * C + 2 * C)

    return pl.pallas_call(
        kern,
        out_shape=jax.ShapeDtypeStruct((Lq, C), cond2d.dtype),
        grid_spec=pltpu.PrefetchScalarGridSpec(
            num_scalar_prefetch=0,
            grid=(Lq // tq,),
            in_specs=[
                pl.BlockSpec((tq, C), lambda i: (i, 0)),   # cond query tile (pipelined)
                pl.BlockSpec((Lk, C), lambda i: (0, 0)),   # full k, resident across steps
                pl.BlockSpec((Lk, C), lambda i: (0, 0)),   # full v, resident across steps
                pl.BlockSpec((C, C), lambda i: (0, 0)),    # wq^T
                pl.BlockSpec((1, C), lambda i: (0, 0)),    # bq
                pl.BlockSpec((C, C), lambda i: (0, 0)),    # wp^T
                pl.BlockSpec((1, C), lambda i: (0, 0)),    # bp
            ],
            out_specs=pl.BlockSpec((tq, C), lambda i: (i, 0)),
        ),
        compiler_params=pltpu.CompilerParams(
            dimension_semantics=("parallel",),
            vmem_limit_bytes=_VMEM_LIMIT),
        cost_estimate=pl.CostEstimate(flops=flops, transcendentals=transcend,
                                      bytes_accessed=bytes_acc),
    )(cond2d, k2d, v2d, wq_t, bq.reshape(1, C), wp_t, bp.reshape(1, C))


# ---------------------------------------------------------------------------
# Forward pass (wrapper does only metadata-only reshapes)
# ---------------------------------------------------------------------------

def mhca_condition_forward(x, cond, params, num_heads, *,
                           block_rows=256, block_q=128):
    """MultiHeadCrossAttentionForCondition.forward with mask=None."""
    B, N, C = x.shape
    # TODO(synk): mask != None (xformers BlockDiagonalMask per-sample seqlens) path
    # is not implemented; this covers the default mask=None full cross-attention.
    x2d = x.reshape(B * N, C)        # metadata-only (row-major)
    cond2d = cond.reshape(-1, C)     # metadata-only (module flattens cond anyway)

    k2d, v2d = kv_projection(x2d, params["wk_t"], params["bk"],
                             params["wv_t"], params["bv"], block_rows=block_rows)
    out2d = cross_attention_proj(cond2d, k2d, v2d,
                                 params["wq_t"], params["bq"],
                                 params["wp_t"], params["bp"],
                                 num_heads=num_heads, block_q=block_q)
    return out2d.reshape(1, -1, C)


# ---------------------------------------------------------------------------
# Pure-JAX reference (for correctness check)
# ---------------------------------------------------------------------------

def reference(x, cond, params, num_heads):
    B, N, C = x.shape
    hd = C // num_heads
    hp = lax.Precision.HIGHEST
    q = jnp.matmul(cond.reshape(-1, C), params["wq_t"], precision=hp) + params["bq"]
    k = jnp.matmul(x.reshape(-1, C), params["wk_t"], precision=hp) + params["bk"]
    v = jnp.matmul(x.reshape(-1, C), params["wv_t"], precision=hp) + params["bv"]
    q = q.reshape(1, -1, num_heads, hd)
    k = k.reshape(1, -1, num_heads, hd)
    v = v.reshape(1, -1, num_heads, hd)
    attn = jnp.einsum("bqhd,bkhd->bhqk", q * hd ** -0.5, k, precision=hp)
    attn = jax.nn.softmax(attn.astype(jnp.float32), axis=-1)
    o = jnp.einsum("bhqk,bkhd->bqhd", attn, v, precision=hp)
    o = o.reshape(1, -1, C)
    return jnp.matmul(o, params["wp_t"], precision=hp) + params["bp"]


# ---------------------------------------------------------------------------
# Main
# ---------------------------------------------------------------------------

if __name__ == "__main__":
    B, N, M_cond = 2, 64, 64           # x tokens per batch, cond tokens per batch
    d_model, num_heads = 64, 4         # head_dim = 16
    C = d_model

    key = jax.random.PRNGKey(0)
    kx, kc, k1, k2, k3, k4, k5, k6 = jax.random.split(key, 8)

    x = jax.random.normal(kx, (B, N, C), dtype=jnp.float32)
    cond = jax.random.normal(kc, (B, M_cond, C), dtype=jnp.float32)

    # torch nn.Linear layouts: weight (out, in), y = x @ W^T + b
    wq = jax.random.normal(k1, (C, C), jnp.float32) * 0.05
    bq = jax.random.normal(k2, (C,), jnp.float32) * 0.05
    wkv = jax.random.normal(k3, (2 * C, C), jnp.float32) * 0.05
    bkv = jax.random.normal(k4, (2 * C,), jnp.float32) * 0.05
    wp = jax.random.normal(k5, (C, C), jnp.float32) * 0.05
    bp = jax.random.normal(k6, (C,), jnp.float32) * 0.05

    wkv_t = wkv.T                       # (C, 2C); columns [:C] -> k, [C:] -> v
    params = {
        "wq_t": wq.T, "bq": bq,
        "wk_t": wkv_t[:, :C], "bk": bkv[:C],
        "wv_t": wkv_t[:, C:], "bv": bkv[C:],
        "wp_t": wp.T, "bp": bp,
    }

    # block_rows / block_q chosen so each kernel runs >= 2 pipelined grid steps here.
    out = mhca_condition_forward(x, cond, params, num_heads,
                                 block_rows=64, block_q=64)
    out = jax.block_until_ready(out)

    ref = reference(x, cond, params, num_heads)
    assert out.shape == (1, B * M_cond, C)
    max_err = float(jnp.max(jnp.abs(out - ref)))
    assert jnp.allclose(out, ref, rtol=2e-3, atol=2e-3), \
        f"mismatch vs reference (max abs err {max_err})"

    print("KERNEL_OK")
</pallas_src>

<mosaic_0001>
module attributes {stable_mosaic.version = 11 : i64} {
  func.func @_kv_proj_kernel(%arg0: i32, %arg1: memref<64x64xf32, #tpu.memory_space<vmem>>, %arg2: memref<64x64xf32, #tpu.memory_space<vmem>>, %arg3: memref<1x64xf32, #tpu.memory_space<vmem>>, %arg4: memref<64x64xf32, #tpu.memory_space<vmem>>, %arg5: memref<1x64xf32, #tpu.memory_space<vmem>>, %arg6: memref<64x64xf32, #tpu.memory_space<vmem>>, %arg7: memref<64x64xf32, #tpu.memory_space<vmem>>) attributes {dimension_semantics = [#tpu.dimension_semantics<parallel>], iteration_bounds = array<i64: 2>, scalar_prefetch = 0 : i64, scratch_operands = 0 : i64, tpu.core_type = #tpu.core_type<tc>, window_params = [{transform_indices = @transform_0, window_bounds = array<i64: 64, 64>}, {pipeline_mode = #tpu.pipeline_mode<synchronous>, transform_indices = @transform_1, window_bounds = array<i64: 64, 64>}, {pipeline_mode = #tpu.pipeline_mode<synchronous>, transform_indices = @transform_2, window_bounds = array<i64: 1, 64>}, {pipeline_mode = #tpu.pipeline_mode<synchronous>, transform_indices = @transform_3, window_bounds = array<i64: 64, 64>}, {pipeline_mode = #tpu.pipeline_mode<synchronous>, transform_indices = @transform_4, window_bounds = array<i64: 1, 64>}, {transform_indices = @transform_5, window_bounds = array<i64: 64, 64>}, {transform_indices = @transform_6, window_bounds = array<i64: 64, 64>}]} {
    %c0 = arith.constant 0 : index
    %c0_0 = arith.constant 0 : index
    %0 = vector.load %arg1[%c0, %c0_0] : memref<64x64xf32, #tpu.memory_space<vmem>>, vector<64x64xf32>
    %c0_1 = arith.constant 0 : index
    %c0_2 = arith.constant 0 : index
    %1 = vector.load %arg2[%c0_1, %c0_2] : memref<64x64xf32, #tpu.memory_space<vmem>>, vector<64x64xf32>
    %cst = arith.constant dense<0.000000e+00> : vector<64x64xf32>
    %2 = tpu.matmul %0, %1, %cst {dimension_numbers = #tpu.dot_dimension_numbers<[1], [0], [0], [1], [0, 0, 1, 1], [], []>} : vector<64x64xf32>, vector<64x64xf32>, vector<64x64xf32> -> vector<64x64xf32>
    %c0_3 = arith.constant 0 : index
    %c0_4 = arith.constant 0 : index
    %3 = vector.load %arg3[%c0_3, %c0_4] : memref<1x64xf32, #tpu.memory_space<vmem>>, vector<1x64xf32>
    %4 = vector.broadcast %3 : vector<1x64xf32> to vector<64x64xf32>
    %5 = arith.addf %2, %4 : vector<64x64xf32>
    %c0_5 = arith.constant 0 : index
    %c0_6 = arith.constant 0 : index
    %6 = vector.load %arg4[%c0_5, %c0_6] : memref<64x64xf32, #tpu.memory_space<vmem>>, vector<64x64xf32>
    %cst_7 = arith.constant dense<0.000000e+00> : vector<64x64xf32>
    %7 = tpu.matmul %0, %6, %cst_7 {dimension_numbers = #tpu.dot_dimension_numbers<[1], [0], [0], [1], [0, 0, 1, 1], [], []>} : vector<64x64xf32>, vector<64x64xf32>, vector<64x64xf32> -> vector<64x64xf32>
    %c0_8 = arith.constant 0 : index
    %c0_9 = arith.constant 0 : index
    %8 = vector.load %arg5[%c0_8, %c0_9] : memref<1x64xf32, #tpu.memory_space<vmem>>, vector<1x64xf32>
    %9 = vector.broadcast %8 : vector<1x64xf32> to vector<64x64xf32>
    %10 = arith.addf %7, %9 : vector<64x64xf32>
    %c0_10 = arith.constant 0 : index
    %c0_11 = arith.constant 0 : index
    %11 = vector.load %arg6[%c0_10, %c0_11] : memref<64x64xf32, #tpu.memory_space<vmem>>, vector<64x64xf32>
    tpu.vector_store %arg6[%c0_10, %c0_11], %5 {strides = array<i32>} : memref<64x64xf32, #tpu.memory_space<vmem>>, vector<64x64xf32>,
    %c0_12 = arith.constant 0 : index
    %c0_13 = arith.constant 0 : index
    %12 = vector.load %arg7[%c0_12, %c0_13] : memref<64x64xf32, #tpu.memory_space<vmem>>, vector<64x64xf32>
    tpu.vector_store %arg7[%c0_12, %c0_13], %10 {strides = array<i32>} : memref<64x64xf32, #tpu.memory_space<vmem>>, vector<64x64xf32>,
    return
  }
  func.func @transform_0(%arg0: i32) -> (i32, i32) {
    %c0_i32 = arith.constant 0 : i32
    %c0_i32_0 = arith.constant 0 : i32
    return %arg0, %c0_i32 : i32, i32
  }
  func.func @transform_1(%arg0: i32) -> (i32, i32) {
    %c0_i32 = arith.constant 0 : i32
    %c0_i32_0 = arith.constant 0 : i32
    %c0_i32_1 = arith.constant 0 : i32
    return %c0_i32, %c0_i32_0 : i32, i32
  }
  func.func @transform_2(%arg0: i32) -> (i32, i32) {
    %c0_i32 = arith.constant 0 : i32
    %c0_i32_0 = arith.constant 0 : i32
    %c0_i32_1 = arith.constant 0 : i32
    return %c0_i32, %c0_i32_0 : i32, i32
  }
  func.func @transform_3(%arg0: i32) -> (i32, i32) {
    %c0_i32 = arith.constant 0 : i32
    %c0_i32_0 = arith.constant 0 : i32
    %c0_i32_1 = arith.constant 0 : i32
    return %c0_i32, %c0_i32_0 : i32, i32
  }
  func.func @transform_4(%arg0: i32) -> (i32, i32) {
    %c0_i32 = arith.constant 0 : i32
    %c0_i32_0 = arith.constant 0 : i32
    %c0_i32_1 = arith.constant 0 : i32
    return %c0_i32, %c0_i32_0 : i32, i32
  }
  func.func @transform_5(%arg0: i32) -> (i32, i32) {
    %c0_i32 = arith.constant 0 : i32
    %c0_i32_0 = arith.constant 0 : i32
    return %arg0, %c0_i32 : i32, i32
  }
  func.func @transform_6(%arg0: i32) -> (i32, i32) {
    %c0_i32 = arith.constant 0 : i32
    %c0_i32_0 = arith.constant 0 : i32
    return %arg0, %c0_i32 : i32, i32
  }
}

</mosaic_0001>

<bundles_post_ra>
// kernel: tpu_custom_call.1
= control target key start
LH: loop header
LB: loop body
LE: loop exit
PB: predicated region body
PF: predicated region fallthrough
CT: control target
= control target key end

     0   :  { %s850_s21 = smov 0   ;;  %s991_s0 = inlined_call_operand.vmem [shape: f32[128,64], index: 0, kind: input, shape index: {}]   ;;  %s992_s1 = inlined_call_operand.vmem [shape: f32[64,64], index: 1, kind: input, shape index: {}]   ;;  %s993_s2 = inlined_call_operand.vmem [shape: f32[1,64], index: 2, kind: input, shape index: {}]   ;;  %s994_s3 = inlined_call_operand.vmem [shape: f32[64,64], index: 3, kind: input, shape index: {}]   ;;  %s995_s4 = inlined_call_operand.vmem [shape: f32[1,64], index: 4, kind: input, shape index: {}]   ;;  %s996_s5 = inlined_call_operand.vmem [shape: f32[128,64], index: 5, kind: output, shape index: {0}]   ;;  %s997_s6 = inlined_call_operand.vmem [shape: f32[128,64], index: 6, kind: output, shape index: {1}]  }
   0x1 LB: > { %s648_s22 = sadd.s32 4294967295, %s813_s21   ;;  %p652_p0 = scmp.ge.s32.totalorder %s813_s21, 1  ;;  %s813_s21 = sphi %s850_s21, %s17_s21  }
   0x2   : > { %p216_p1 = scmp.lt.s32.totalorder %s813_s21, 3 }
   0x4   : > { %p217_p2 = pnand %p652_p0, %p216_p1 }
   0x5   : > { %v277_v0 = vld [vmem:[%s992_s1] sm:$0xff] (!%p217_p2)  ;;  %v278_v1 = vld [vmem:[%s992_s1 + $0x8] sm:$0xff] (!%p217_p2)  ;;  %s653_s29 = sshll.u32 (!%p217_p2), %s648_s22, 3  ;;  %v279_v5 = vld [vmem:[%s992_s1 + $0x10] sm:$0xff] (!%p217_p2)  ;;  %vm292_vm0 = vcmask (!%p217_p2), 523264  }
   0x6   : > { %220 = sbr.rel (%p217_p2) target bundleno = 253 (0xfd), region = 40  ;;  %v422_v2 = vld [vmem:[%s994_s3] sm:$0xff] (!%p217_p2)  ;;  %v767_v3 = vpack.c.bf16 (!%p217_p2), %v278_v1, %v277_v0  ;;  %v423_v4 = vld [vmem:[%s994_s3 + $0x8] sm:$0xff] (!%p217_p2)  ;;  %v280_v6 = vld [vmem:[%s992_s1 + $0x18] sm:$0xff] (!%p217_p2)  ;;  %p252_p3 = scmp.lt.s32.totalorder (!%p217_p2), %s653_s29, 15 }
   0x7   : > { %v783_v7 = vpack.c.bf16 (!%p217_p2), %v423_v4, %v422_v2  ;;  %v771_v8 = vpack.c.bf16 (!%p217_p2), %v280_v6, %v279_v5  ;;  %v424_v9 = vld [vmem:[%s994_s3 + $0x10] sm:$0xff] (!%p217_p2)  ;;  %v425_v10 = vld [vmem:[%s994_s3 + $0x18] sm:$0xff] (!%p217_p2)  ;;  %v281_v11 = vld [vmem:[%s992_s1 + $0x20] sm:$0xff] (!%p217_p2) }
   0x8   : > { %768 = vmatprep.subr.bf16.mxu0 (!%p217_p2), %v767_v3  ;;  %v787_v12 = vpack.c.bf16 (!%p217_p2), %v425_v10, %v424_v9  ;;  %v282_v13 = vld [vmem:[%s992_s1 + $0x28] sm:$0xff] (!%p217_p2)  ;;  %v426_v14 = vld [vmem:[%s994_s3 + $0x20] sm:$0xff] (!%p217_p2)  ;;  %v283_v18 = vld [vmem:[%s992_s1 + $0x30] sm:$0xff] (!%p217_p2) }
   0x9   : > { %v427_v15 = vld [vmem:[%s994_s3 + $0x28] sm:$0xff] (!%p217_p2)  ;;  %784 = vmatprep.subr.bf16.mxu1 (!%p217_p2), %v783_v7  ;;  %770 = vmatpush3.bf16.msra.mxu0 (!%p217_p2), %v767_v3  ;;  %v775_v16 = vpack.c.bf16 (!%p217_p2), %v282_v13, %v281_v11  ;;  %v284_v19 = vld [vmem:[%s992_s1 + $0x38] sm:$0xff] (!%p217_p2)  ;;  %v428_v20 = vld [vmem:[%s994_s3 + $0x30] sm:$0xff] (!%p217_p2) }
   0xa   : > { %786 = vmatpush3.bf16.msra.mxu1 (!%p217_p2), %v783_v7  ;;  %772 = vmatprep.subr.bf16.mxu0 (!%p217_p2), %v771_v8  ;;  %v791_v17 = vpack.c.bf16 (!%p217_p2), %v427_v15, %v426_v14  ;;  %v429_v21 = vld [vmem:[%s994_s3 + $0x38] sm:$0xff] (!%p217_p2)  ;;  %v779_v23 = vpack.c.bf16 (!%p217_p2), %v284_v19, %v283_v18  ;;  %v659_v32 = vld [vmem:[%s993_s2] ss:$0 sm:$0xff] (!%p217_p2) }
   0xb   : > { %788 = vmatprep.subr.bf16.mxu1 (!%p217_p2), %v787_v12  ;;  %v795_v24 = vpack.c.bf16 (!%p217_p2), %v429_v21, %v428_v20  ;;  %v668_v33 = vld [vmem:[%s995_s4] ss:$0 sm:$0xff] (!%p217_p2) }
   0xd   : > { %s999_s29 = smov (!%p252_p3, %s653_s29), 15  ;;  %774 = vmatpush3.bf16.msra.mxu0 %v771_v8 }
   0xe   : > { %s894_s25 = sshll.u32 %s999_s29, 3  ;;  %790 = vmatpush3.bf16.msra.mxu1 %v787_v12  ;;  %776 = vmatprep.subr.bf16.mxu0 %v775_v16 }
   0xf   : > { %s906_s9 = scalar_lea.vmem %s991_s0, %s894_s25  ;;  %792 = vmatprep.subr.bf16.mxu1 %v791_v17  ;;  %s948_s19 = scalar_lea.vmem %s996_s5, %s894_s25 }
  0x10   : > { %v269_v22 = vld [vmem:[%s906_s9] sm:$0xff]  ;;  %v270_v25 = vld [vmem:[%s906_s9 + $0x8] sm:$0xff]  ;;  %v271_v26 = vld [vmem:[%s906_s9 + $0x10] sm:$0xff]  ;;  %s954_s23 = scalar_lea.vmem %s997_s6, %s894_s25 }
  0x11   : > { %727 = vmatprep.mubr.msk.f32.mxu0 %vm292_vm0, %v269_v22  ;;  %755 = vmatprep.mubr.msk.f32.mxu1 %vm292_vm0, %v269_v22  ;;  %v272_v27 = vld [vmem:[%s906_s9 + $0x18] sm:$0xff]  ;;  %v273_v28 = vld [vmem:[%s906_s9 + $0x20] sm:$0xff]  ;;  %v274_v29 = vld [vmem:[%s906_s9 + $0x28] sm:$0xff] }
  0x12   : > { %778 = vmatpush3.bf16.msra.mxu0 %v775_v16  ;;  %794 = vmatpush3.bf16.msra.mxu1 %v791_v17  ;;  %v275_v30 = vld [vmem:[%s906_s9 + $0x30] sm:$0xff]  ;;  %v276_v31 = vld [vmem:[%s906_s9 + $0x38] sm:$0xff] }
  0x13   : > { %780 = vmatprep.subr.bf16.mxu0 %v779_v23  ;;  %796 = vmatprep.subr.bf16.mxu1 %v795_v24 }
  0x16   : > { %782 = vmatpush3.bf16.msra.mxu0 %v779_v23  ;;  %798 = vmatpush3.bf16.msra.mxu1 %v795_v24 }
  0x19   : > { %728 = vmatmul.mubr.msk.f32.vlgmr.msra.gmra.mrb[0].mxu0 %vm292_vm0, %v270_v25  ;;  %756 = vmatmul.mubr.msk.f32.vlgmr.msra.gmra.mrb[0].mxu1 %vm292_vm0, %v270_v25 }
  0x1a   : > { %730 = vmatprep.mubr.msk.f32.mxu0 %vm292_vm0, %v271_v26  ;;  %758 = vmatprep.mubr.msk.f32.mxu1 %vm292_vm0, %v271_v26 }
  0x1d   : > { %731 = vmatmul.mubr.msk.f32.gmra.mrb[2].mxu0 %vm292_vm0, %v272_v27  ;;  %759 = vmatmul.mubr.msk.f32.gmra.mrb[2].mxu1 %vm292_vm0, %v272_v27 }
  0x1e   : > { %733 = vmatprep.mubr.msk.f32.mxu0 %vm292_vm0, %v273_v28  ;;  %761 = vmatprep.mubr.msk.f32.mxu1 %vm292_vm0, %v273_v28 }
  0x21   : > { %734 = vmatmul.mubr.msk.f32.gmra.mrb[4].mxu0 %vm292_vm0, %v274_v29  ;;  %762 = vmatmul.mubr.msk.f32.gmra.mrb[4].mxu1 %vm292_vm0, %v274_v29 }
  0x22   : > { %736 = vmatprep.mubr.msk.f32.mxu0 %vm292_vm0, %v275_v30  ;;  %764 = vmatprep.mubr.msk.f32.mxu1 %vm292_vm0, %v275_v30 }
  0x25   : > { %737 = vmatmul.mubr.msk.f32.gmra.mrb[6].mxu0 %vm292_vm0, %v276_v31  ;;  %765 = vmatmul.mubr.msk.f32.gmra.mrb[6].mxu1 %vm292_vm0, %v276_v31 }
  0xec   : > { %v729_v34 = vpop.f32.mrb[0].mxu0  ;;  %v757_v36 = vpop.f32.mrb[0].mxu1 }
  0xed   : > { %v389_v35 = vadd.f32 %v729_v34, %v659_v32  ;;  %v383_v37 = vpop.f32.mrb[1].mxu0  ;;  %v509_v38 = vadd.f32 %v757_v36, %v668_v33  ;;  %v503_v40 = vpop.f32.mrb[1].mxu1 }
  0xee   : > { %v384_v39 = vadd.f32 %v659_v32, %v383_v37  ;;  %v504_v41 = vadd.f32 %v668_v33, %v503_v40 }
  0xef   : > { %543 = vst.msk [vmem:[%s948_s19 + $0x8] sm:$0xff] %vm292_vm0, %v389_v35  ;;  %551 = vst.msk [vmem:[%s954_s23 + $0x8] sm:$0xff] %vm292_vm0, %v509_v38 }
  0xf0   : > { %542 = vst.msk [vmem:[%s948_s19] sm:$0xff] %vm292_vm0, %v384_v39  ;;  %v732_v42 = vpop.f32.mrb[2].mxu0  ;;  %550 = vst.msk [vmem:[%s954_s23] sm:$0xff] %vm292_vm0, %v504_v41  ;;  %v760_v44 = vpop.f32.mrb[2].mxu1 }
  0xf1   : > { %v399_v43 = vadd.f32 %v732_v42, %v659_v32  ;;  %v393_v45 = vpop.f32.mrb[3].mxu0  ;;  %v519_v46 = vadd.f32 %v760_v44, %v668_v33  ;;  %v513_v48 = vpop.f32.mrb[3].mxu1 }
  0xf2   : > { %v394_v47 = vadd.f32 %v659_v32, %v393_v45  ;;  %v514_v49 = vadd.f32 %v668_v33, %v513_v48 }
  0xf3   : > { %545 = vst.msk [vmem:[%s948_s19 + $0x18] sm:$0xff] %vm292_vm0, %v399_v43  ;;  %553 = vst.msk [vmem:[%s954_s23 + $0x18] sm:$0xff] %vm292_vm0, %v519_v46 }
  0xf4   : > { %544 = vst.msk [vmem:[%s948_s19 + $0x10] sm:$0xff] %vm292_vm0, %v394_v47  ;;  %v735_v50 = vpop.f32.mrb[4].mxu0  ;;  %552 = vst.msk [vmem:[%s954_s23 + $0x10] sm:$0xff] %vm292_vm0, %v514_v49  ;;  %v763_v52 = vpop.f32.mrb[4].mxu1 }
  0xf5   : > { %v409_v51 = vadd.f32 %v735_v50, %v659_v32  ;;  %v403_v53 = vpop.f32.mrb[5].mxu0  ;;  %v529_v54 = vadd.f32 %v763_v52, %v668_v33  ;;  %v523_v56 = vpop.f32.mrb[5].mxu1 }
  0xf6   : > { %v404_v55 = vadd.f32 %v659_v32, %v403_v53  ;;  %v524_v57 = vadd.f32 %v668_v33, %v523_v56 }
  0xf7   : > { %547 = vst.msk [vmem:[%s948_s19 + $0x28] sm:$0xff] %vm292_vm0, %v409_v51  ;;  %555 = vst.msk [vmem:[%s954_s23 + $0x28] sm:$0xff] %vm292_vm0, %v529_v54 }
  0xf8   : > { %546 = vst.msk [vmem:[%s948_s19 + $0x20] sm:$0xff] %vm292_vm0, %v404_v55  ;;  %v738_v58 = vpop.f32.mrb[6].mxu0  ;;  %554 = vst.msk [vmem:[%s954_s23 + $0x20] sm:$0xff] %vm292_vm0, %v524_v57  ;;  %v766_v60 = vpop.f32.mrb[6].mxu1 }
  0xf9   : > { %v419_v59 = vadd.f32 %v738_v58, %v659_v32  ;;  %v413_v61 = vpop.f32.mrb[7].mxu0  ;;  %v539_v62 = vadd.f32 %v766_v60, %v668_v33  ;;  %v533_v0 = vpop.f32.mrb[7].mxu1 }
  0xfa   : > { %v414_v63 = vadd.f32 %v659_v32, %v413_v61  ;;  %v534_v1 = vadd.f32 %v668_v33, %v533_v0 }
  0xfb   : > { %549 = vst.msk [vmem:[%s948_s19 + $0x38] sm:$0xff] %vm292_vm0, %v419_v59  ;;  %557 = vst.msk [vmem:[%s954_s23 + $0x38] sm:$0xff] %vm292_vm0, %v539_v62 }
  0xfc   : > { %548 = vst.msk [vmem:[%s948_s19 + $0x30] sm:$0xff] %vm292_vm0, %v414_v63  ;;  %556 = vst.msk [vmem:[%s954_s23 + $0x30] sm:$0xff] %vm292_vm0, %v534_v1 }
  0xfd PF: > { %s17_s21 = sadd.s32 1, %s813_s21  }
  0xfe   : > { %p14_p4 = scmp.ge.s32.totalorder %s17_s21, 4  }
 0x100   :  { %16 = sbr.rel (!%p14_p4) target bundleno = 1 (0x1), region = 82 }

</bundles_post_ra>
